<compile_context>
chip_gen: v7x
topology: tpu7x:2x2x1
jax: 0.10.0
libtpu: 0.0.40
codegen_flags: <defaults>
</compile_context>

<pallas_src>
import functools

import jax
import jax.numpy as jnp
from jax import lax
from jax.experimental import pallas as pl
from jax.experimental.pallas import tpu as pltpu


def _nll_loss_kernel(pred_ref, tgt_ref, w_ref, out_ref, mp_acc, cnt_acc, *, n):
    core = pl.program_id(0)          # TensorCore split (leading "parallel" axis)
    i = pl.program_id(1)             # streaming step within this core's range
    n_inner = pl.num_programs(1)
    tile_rows = pred_ref.shape[0]
    c_k = mp_acc.shape[0]            # sublane-padded class count

    @pl.when(i == 0)
    def _init():
        mp_acc[...] = jnp.zeros_like(mp_acc)
        cnt_acc[...] = jnp.zeros_like(cnt_acc)

    start = (core * n_inner + i) * tile_rows      # nominal global row offset
    pred = pred_ref[...].astype(jnp.float32)      # (TR, C): samples on sublanes
    tgt = tgt_ref[...]                            # (1, TR): samples on lanes
    cls = lax.broadcasted_iota(jnp.int32, (c_k, tile_rows), 0)   # class per sublane

    def _accumulate(onehot, rhs):
        # mp_acc[k, c] += sum_i onehot[k, i] * rhs[i, c]
        # The MXU contraction does the sample-axis "transpose" implicitly; only
        # the diagonal of mp_acc is consumed at finalize.
        mp_acc[...] += jnp.dot(onehot, rhs, preferred_element_type=jnp.float32)
        cnt_acc[...] += jnp.sum(onehot, axis=1, keepdims=True)

    is_tail = start + tile_rows > n               # ragged tail or clamped duplicate

    @pl.when(jnp.logical_not(is_tail))
    def _full_tile():                             # common path: no masking work
        _accumulate(jnp.where(cls == tgt, 1.0, 0.0), pred)

    @pl.when(is_tail)
    def _masked_tile():                           # at most 1-2 blocks per call
        lane_ok = (start + lax.broadcasted_iota(jnp.int32, (1, tile_rows), 1)) < n
        row_ok = (start + lax.broadcasted_iota(jnp.int32, (tile_rows, 1), 0)) < n
        onehot = jnp.where((cls == tgt) & lane_ok, 1.0, 0.0)
        # Mask pred itself (not just the one-hot) so garbage tail rows can never
        # propagate NaN/Inf through the matmul.
        _accumulate(onehot, jnp.where(row_ok, pred, 0.0))

    @pl.when(i == n_inner - 1)
    def _finalize():
        n_c = mp_acc.shape[1]
        r_i = lax.broadcasted_iota(jnp.int32, (c_k, n_c), 0)
        c_i = lax.broadcasted_iota(jnp.int32, (c_k, n_c), 1)
        per_cls = jnp.sum(jnp.where(r_i == c_i, mp_acc[...], 0.0),
                          axis=1, keepdims=True)          # (c_k, 1): sum_{t_i=c} pred[i, c]
        w = w_ref[...]                                    # (c_k, 1) f32, zero-padded
        num = jnp.sum(w * per_cls)                        # sum_i w[t_i] * pred[i, t_i]
        den = jnp.sum(w * cnt_acc[...])                   # sum_i w[t_i]
        lane = lax.broadcasted_iota(jnp.int32, (1, 128), 1)
        out_ref[0] = jnp.where(lane == 0, num, jnp.where(lane == 1, den, 0.0))


def nll_loss_pallas(pred, target, weight, *, tile_rows=None,
                    max_tile_bytes=4 << 20, num_core_splits=2):
    """pred: (N, C) log-probs (any float dtype), target: (N,) int, weight: (C,).

    Returns scalar f32 weighted-mean NLL loss (== F.nll_loss(pred, target, weight)).
    num_core_splits=2 gives each v7x TensorCore half of N (harmless elsewhere).
    """
    n, c = pred.shape
    c_k = max(8, -(-c // 8) * 8)                  # padded class rows for the one-hot

    # Each (tile_rows, C) pred block is lane-padded to 128 inside VMEM, so its
    # footprint is tile_rows * 128 * itemsize regardless of C. tile_rows must be
    # a multiple of 128 (target lane constraint + any dtype's sublane packing).
    itemsize = jnp.dtype(pred.dtype).itemsize
    if tile_rows is None:
        tile_rows = max(128, ((max_tile_bytes // (128 * itemsize)) // 128) * 128)
    else:
        tile_rows = max(128, -(-tile_rows // 128) * 128)

    n_blocks = -(-n // tile_rows)
    inner = -(-n_blocks // num_core_splits)
    last_block = n_blocks - 1

    # Clamp nominal block indices that run past the array (odd splits); those
    # duplicate blocks are fully masked out in-kernel via `start >= n`.
    def pred_map(s, i):
        return (jnp.minimum(s * inner + i, last_block), 0)

    def tgt_map(s, i):
        return (0, jnp.minimum(s * inner + i, last_block))

    target2d = target.reshape(1, n).astype(jnp.int32)      # lane-dense, tiny
    weight_col = jnp.pad(weight.reshape(c, 1).astype(jnp.float32),
                         ((0, c_k - c), (0, 0)))

    partials = pl.pallas_call(
        functools.partial(_nll_loss_kernel, n=n),
        out_shape=jax.ShapeDtypeStruct((num_core_splits, 1, 128), jnp.float32),
        grid_spec=pltpu.PrefetchScalarGridSpec(
            num_scalar_prefetch=0,
            grid=(num_core_splits, inner),
            in_specs=[
                pl.BlockSpec((tile_rows, c), pred_map),              # pred, streamed
                pl.BlockSpec((1, tile_rows), tgt_map),               # target, streamed
                pl.BlockSpec(memory_space=pltpu.MemorySpace.VMEM),   # weight, resident
            ],
            out_specs=pl.BlockSpec((1, 1, 128), lambda s, i: (s, 0, 0)),
            scratch_shapes=[
                pltpu.VMEM((c_k, c), jnp.float32),   # per-class masked-pred sums
                pltpu.VMEM((c_k, 1), jnp.float32),   # per-class selected counts
            ],
        ),
        compiler_params=pltpu.CompilerParams(
            dimension_semantics=("parallel", "arbitrary"),
            vmem_limit_bytes=32 << 20,
        ),
    )(pred, target2d, weight_col)

    num = jnp.sum(partials[:, 0, 0])
    den = jnp.sum(partials[:, 0, 1])
    # Matches PyTorch: nan if the selected-weight sum is 0.
    return -num / den


if __name__ == "__main__":
    key = jax.random.PRNGKey(0)
    k1, k2, k3 = jax.random.split(key, 3)

    # Small shapes consistent with PointCNN semantic segmentation:
    # N = flattened batch*points, C = 13 classes (S3DIS).
    N, C = 300, 13

    logits = jax.random.normal(k1, (N, C), dtype=jnp.float32)
    pred = jax.nn.log_softmax(logits, axis=-1)
    # Snap log-probs to bf16-representable values so the correctness check is
    # independent of how the MXU emulates f32 matmuls on a given generation.
    pred = pred.astype(jnp.bfloat16).astype(jnp.float32)
    target = jax.random.randint(k2, (N,), 0, C, dtype=jnp.int32)
    weight = jax.random.uniform(k3, (C,), dtype=jnp.float32, minval=0.5, maxval=1.5)

    # tile_rows=128 -> 3 row-blocks over N=300 on a (2, 2) grid: exercises
    # multi-step accumulation, the masked ragged-tail block and the clamped
    # (fully masked) duplicate block on the second core-split.
    loss = jax.block_until_ready(nll_loss_pallas(pred, target, weight, tile_rows=128))

    # Reference (plain JAX) for sanity.
    w_t = weight[target]
    ref = -jnp.sum(w_t * pred[jnp.arange(N), target]) / jnp.sum(w_t)
    assert jnp.allclose(loss, ref, rtol=1e-4, atol=1e-5), (loss, ref)

    print("KERNEL_OK")
</pallas_src>

<mosaic_0001>
module attributes {stable_mosaic.version = 11 : i64} {
  func.func @_nll_loss_kernel(%arg0: i32, %arg1: i32, %arg2: memref<128x13xf32, #tpu.memory_space<vmem>>, %arg3: memref<1x128xi32, #tpu.memory_space<vmem>>, %arg4: memref<16x1xf32, #tpu.memory_space<vmem>>, %arg5: memref<1x1x128xf32, #tpu.memory_space<vmem>>, %arg6: memref<16x13xf32, #tpu.memory_space<vmem>>, %arg7: memref<16x1xf32, #tpu.memory_space<vmem>>) attributes {dimension_semantics = [#tpu.dimension_semantics<parallel>, #tpu.dimension_semantics<arbitrary>], iteration_bounds = array<i64: 2, 2>, scalar_prefetch = 0 : i64, scratch_operands = 2 : i64, tpu.core_type = #tpu.core_type<tc>, window_params = [{transform_indices = @transform_0, window_bounds = array<i64: 128, 13>}, {transform_indices = @transform_1, window_bounds = array<i64: 1, 128>}, {pipeline_mode = #tpu.pipeline_mode<synchronous>, transform_indices = @transform_2, window_bounds = array<i64: 16, 1>}, {transform_indices = @transform_3, window_bounds = array<i64: 1, 1, 128>}]} {
    %c0_i32 = arith.constant 0 : i32
    %0 = arith.cmpi eq, %arg1, %c0_i32 : i32
    %1 = arith.extui %0 : i1 to i32
    %c0_i32_0 = arith.constant 0 : i32
    %2 = arith.cmpi ne, %1, %c0_i32_0 : i32
    scf.if %2 {
      %cst = arith.constant 0.000000e+00 : f32
      %19 = vector.broadcast %cst : f32 to vector<16x13xf32>
      %c0_8 = arith.constant 0 : index
      %c0_9 = arith.constant 0 : index
      %20 = vector.load %arg6[%c0_8, %c0_9] : memref<16x13xf32, #tpu.memory_space<vmem>>, vector<16x13xf32>
      tpu.vector_store %arg6[%c0_8, %c0_9], %19 {strides = array<i32>} : memref<16x13xf32, #tpu.memory_space<vmem>>, vector<16x13xf32>,
      %cst_10 = arith.constant 0.000000e+00 : f32
      %21 = vector.broadcast %cst_10 : f32 to vector<16x1xf32>
      %c0_11 = arith.constant 0 : index
      %c0_12 = arith.constant 0 : index
      %22 = vector.load %arg7[%c0_11, %c0_12] : memref<16x1xf32, #tpu.memory_space<vmem>>, vector<16x1xf32>
      tpu.vector_store %arg7[%c0_11, %c0_12], %21 {strides = array<i32>} : memref<16x1xf32, #tpu.memory_space<vmem>>, vector<16x1xf32>,
    } else {
    }
    %c2_i32 = arith.constant 2 : i32
    %3 = arith.muli %arg0, %c2_i32 : i32
    %4 = arith.addi %3, %arg1 : i32
    %c128_i32 = arith.constant 128 : i32
    %5 = arith.muli %4, %c128_i32 : i32
    %c0 = arith.constant 0 : index
    %c0_1 = arith.constant 0 : index
    %6 = vector.load %arg2[%c0, %c0_1] : memref<128x13xf32, #tpu.memory_space<vmem>>, vector<128x13xf32>
    %c0_2 = arith.constant 0 : index
    %c0_3 = arith.constant 0 : index
    %7 = vector.load %arg3[%c0_2, %c0_3] : memref<1x128xi32, #tpu.memory_space<vmem>>, vector<1x128xi32>
    %8 = tpu.iota {dimensions = array<i32: 0>} : vector<16x128xi32>
    %c128_i32_4 = arith.constant 128 : i32
    %9 = arith.addi %5, %c128_i32_4 : i32
    %c300_i32 = arith.constant 300 : i32
    %10 = arith.cmpi sgt, %9, %c300_i32 : i32
    %true = arith.constant true
    %11 = arith.xori %10, %true : i1
    %12 = arith.extui %11 : i1 to i32
    %c0_i32_5 = arith.constant 0 : i32
    %13 = arith.cmpi ne, %12, %c0_i32_5 : i32
    scf.if %13 {
      %19 = vector.broadcast %7 : vector<1x128xi32> to vector<16x128xi32>
      %20 = arith.cmpi eq, %8, %19 : vector<16x128xi32>
      %cst = arith.constant 1.000000e+00 : f32
      %cst_8 = arith.constant 0.000000e+00 : f32
      %21 = vector.broadcast %cst : f32 to vector<16x128xf32>
      %22 = vector.broadcast %cst_8 : f32 to vector<16x128xf32>
      %23 = arith.select %20, %21, %22 : vector<16x128xi1>, vector<16x128xf32>
      %c0_9 = arith.constant 0 : index
      %c0_10 = arith.constant 0 : index
      %24 = vector.load %arg6[%c0_9, %c0_10] : memref<16x13xf32, #tpu.memory_space<vmem>>, vector<16x13xf32>
      %cst_11 = arith.constant dense<0.000000e+00> : vector<16x13xf32>
      %25 = tpu.matmul %23, %6, %cst_11 {dimension_numbers = #tpu.dot_dimension_numbers<[1], [0], [0], [1], [0, 0, 1, 1], [], []>} : vector<16x128xf32>, vector<128x13xf32>, vector<16x13xf32> -> vector<16x13xf32>
      %26 = arith.addf %24, %25 : vector<16x13xf32>
      %c0_12 = arith.constant 0 : index
      %c0_13 = arith.constant 0 : index
      %27 = vector.load %arg6[%c0_12, %c0_13] : memref<16x13xf32, #tpu.memory_space<vmem>>, vector<16x13xf32>
      tpu.vector_store %arg6[%c0_12, %c0_13], %26 {strides = array<i32>} : memref<16x13xf32, #tpu.memory_space<vmem>>, vector<16x13xf32>,
      %c0_14 = arith.constant 0 : index
      %c0_15 = arith.constant 0 : index
      %28 = vector.load %arg7[%c0_14, %c0_15] : memref<16x1xf32, #tpu.memory_space<vmem>>, vector<16x1xf32>
      %cst_16 = arith.constant dense<0.000000e+00> : vector<16xf32>
      %29 = vector.multi_reduction <add>, %23, %cst_16 [1] : vector<16x128xf32> to vector<16xf32>
      %30 = vector.shape_cast %29 : vector<16xf32> to vector<16x1xf32>
      %31 = arith.addf %28, %30 : vector<16x1xf32>
      %c0_17 = arith.constant 0 : index
      %c0_18 = arith.constant 0 : index
      %32 = vector.load %arg7[%c0_17, %c0_18] : memref<16x1xf32, #tpu.memory_space<vmem>>, vector<16x1xf32>
      tpu.vector_store %arg7[%c0_17, %c0_18], %31 {strides = array<i32>} : memref<16x1xf32, #tpu.memory_space<vmem>>, vector<16x1xf32>,
    } else {
    }
    %14 = arith.extui %10 : i1 to i32
    %c0_i32_6 = arith.constant 0 : i32
    %15 = arith.cmpi ne, %14, %c0_i32_6 : i32
    scf.if %15 {
      %19 = tpu.iota {dimensions = array<i32: 1>} : vector<1x128xi32>
      %20 = vector.broadcast %5 : i32 to vector<1x128xi32>
      %21 = arith.addi %20, %19 : vector<1x128xi32>
      %c300_i32_8 = arith.constant 300 : i32
      %22 = vector.broadcast %c300_i32_8 : i32 to vector<1x128xi32>
      %23 = arith.cmpi slt, %21, %22 : vector<1x128xi32>
      %24 = tpu.iota {dimensions = array<i32: 0>} : vector<128x1xi32>
      %25 = vector.broadcast %5 : i32 to vector<128x1xi32>
      %26 = arith.addi %25, %24 : vector<128x1xi32>
      %c300_i32_9 = arith.constant 300 : i32
      %27 = vector.broadcast %c300_i32_9 : i32 to vector<128x1xi32>
      %28 = arith.cmpi slt, %26, %27 : vector<128x1xi32>
      %29 = vector.broadcast %7 : vector<1x128xi32> to vector<16x128xi32>
      %30 = arith.cmpi eq, %8, %29 : vector<16x128xi32>
      %31 = vector.broadcast %23 : vector<1x128xi1> to vector<16x128xi1>
      %32 = arith.andi %30, %31 : vector<16x128xi1>
      %cst = arith.constant 1.000000e+00 : f32
      %cst_10 = arith.constant 0.000000e+00 : f32
      %33 = vector.broadcast %cst : f32 to vector<16x128xf32>
      %34 = vector.broadcast %cst_10 : f32 to vector<16x128xf32>
      %35 = arith.select %32, %33, %34 : vector<16x128xi1>, vector<16x128xf32>
      %cst_11 = arith.constant 0.000000e+00 : f32
      %36 = vector.shape_cast %28 : vector<128x1xi1> to vector<128x1xi1>
      %37 = vector.broadcast %36 : vector<128x1xi1> to vector<128x13xi1>
      %38 = vector.broadcast %cst_11 : f32 to vector<128x13xf32>
      %39 = arith.select %37, %6, %38 : vector<128x13xi1>, vector<128x13xf32>
      %c0_12 = arith.constant 0 : index
      %c0_13 = arith.constant 0 : index
      %40 = vector.load %arg6[%c0_12, %c0_13] : memref<16x13xf32, #tpu.memory_space<vmem>>, vector<16x13xf32>
      %cst_14 = arith.constant dense<0.000000e+00> : vector<16x13xf32>
      %41 = tpu.matmul %35, %39, %cst_14 {dimension_numbers = #tpu.dot_dimension_numbers<[1], [0], [0], [1], [0, 0, 1, 1], [], []>} : vector<16x128xf32>, vector<128x13xf32>, vector<16x13xf32> -> vector<16x13xf32>
      %42 = arith.addf %40, %41 : vector<16x13xf32>
      %c0_15 = arith.constant 0 : index
      %c0_16 = arith.constant 0 : index
      %43 = vector.load %arg6[%c0_15, %c0_16] : memref<16x13xf32, #tpu.memory_space<vmem>>, vector<16x13xf32>
      tpu.vector_store %arg6[%c0_15, %c0_16], %42 {strides = array<i32>} : memref<16x13xf32, #tpu.memory_space<vmem>>, vector<16x13xf32>,
      %c0_17 = arith.constant 0 : index
      %c0_18 = arith.constant 0 : index
      %44 = vector.load %arg7[%c0_17, %c0_18] : memref<16x1xf32, #tpu.memory_space<vmem>>, vector<16x1xf32>
      %cst_19 = arith.constant dense<0.000000e+00> : vector<16xf32>
      %45 = vector.multi_reduction <add>, %35, %cst_19 [1] : vector<16x128xf32> to vector<16xf32>
      %46 = vector.shape_cast %45 : vector<16xf32> to vector<16x1xf32>
      %47 = arith.addf %44, %46 : vector<16x1xf32>
      %c0_20 = arith.constant 0 : index
      %c0_21 = arith.constant 0 : index
      %48 = vector.load %arg7[%c0_20, %c0_21] : memref<16x1xf32, #tpu.memory_space<vmem>>, vector<16x1xf32>
      tpu.vector_store %arg7[%c0_20, %c0_21], %47 {strides = array<i32>} : memref<16x1xf32, #tpu.memory_space<vmem>>, vector<16x1xf32>,
    } else {
    }
    %c1_i32 = arith.constant 1 : i32
    %16 = arith.cmpi eq, %arg1, %c1_i32 : i32
    %17 = arith.extui %16 : i1 to i32
    %c0_i32_7 = arith.constant 0 : i32
    %18 = arith.cmpi ne, %17, %c0_i32_7 : i32
    scf.if %18 {
      %19 = tpu.iota {dimensions = array<i32: 0>} : vector<16x13xi32>
      %20 = tpu.iota {dimensions = array<i32: 1>} : vector<16x13xi32>
      %21 = arith.cmpi eq, %19, %20 : vector<16x13xi32>
      %c0_8 = arith.constant 0 : index
      %c0_9 = arith.constant 0 : index
      %22 = vector.load %arg6[%c0_8, %c0_9] : memref<16x13xf32, #tpu.memory_space<vmem>>, vector<16x13xf32>
      %cst = arith.constant 0.000000e+00 : f32
      %23 = vector.broadcast %cst : f32 to vector<16x13xf32>
      %24 = arith.select %21, %22, %23 : vector<16x13xi1>, vector<16x13xf32>
      %cst_10 = arith.constant dense<0.000000e+00> : vector<16xf32>
      %25 = vector.multi_reduction <add>, %24, %cst_10 [1] : vector<16x13xf32> to vector<16xf32>
      %26 = vector.shape_cast %25 : vector<16xf32> to vector<16x1xf32>
      %c0_11 = arith.constant 0 : index
      %c0_12 = arith.constant 0 : index
      %27 = vector.load %arg4[%c0_11, %c0_12] : memref<16x1xf32, #tpu.memory_space<vmem>>, vector<16x1xf32>
      %28 = arith.mulf %27, %26 : vector<16x1xf32>
      %29 = vector.shape_cast %28 : vector<16x1xf32> to vector<1x16x1xf32>
      %cst_13 = arith.constant dense<0.000000e+00> : vector<1xf32>
      %30 = vector.multi_reduction <add>, %29, %cst_13 [1, 2] : vector<1x16x1xf32> to vector<1xf32>
      %31 = vector.shape_cast %30 : vector<1xf32> to vector<1x1x1xf32>
      %32 = vector.extract %31[0, 0, 0] : f32 from vector<1x1x1xf32>
      %c0_14 = arith.constant 0 : index
      %c0_15 = arith.constant 0 : index
      %33 = vector.load %arg7[%c0_14, %c0_15] : memref<16x1xf32, #tpu.memory_space<vmem>>, vector<16x1xf32>
      %34 = arith.mulf %27, %33 : vector<16x1xf32>
      %35 = vector.shape_cast %34 : vector<16x1xf32> to vector<1x16x1xf32>
      %cst_16 = arith.constant dense<0.000000e+00> : vector<1xf32>
      %36 = vector.multi_reduction <add>, %35, %cst_16 [1, 2] : vector<1x16x1xf32> to vector<1xf32>
      %37 = vector.shape_cast %36 : vector<1xf32> to vector<1x1x1xf32>
      %38 = vector.extract %37[0, 0, 0] : f32 from vector<1x1x1xf32>
      %39 = tpu.iota {dimensions = array<i32: 1>} : vector<1x128xi32>
      %c0_i32_17 = arith.constant 0 : i32
      %40 = vector.broadcast %c0_i32_17 : i32 to vector<1x128xi32>
      %41 = arith.cmpi eq, %39, %40 : vector<1x128xi32>
      %c1_i32_18 = arith.constant 1 : i32
      %42 = vector.broadcast %c1_i32_18 : i32 to vector<1x128xi32>
      %43 = arith.cmpi eq, %39, %42 : vector<1x128xi32>
      %cst_19 = arith.constant 0.000000e+00 : f32
      %44 = vector.broadcast %38 : f32 to vector<1x128xf32>
      %45 = vector.broadcast %cst_19 : f32 to vector<1x128xf32>
      %46 = arith.select %43, %44, %45 : vector<1x128xi1>, vector<1x128xf32>
      %47 = vector.broadcast %32 : f32 to vector<1x128xf32>
      %48 = arith.select %41, %47, %46 : vector<1x128xi1>, vector<1x128xf32>
      %c0_20 = arith.constant 0 : index
      %c0_21 = arith.constant 0 : index
      %c0_22 = arith.constant 0 : index
      %49 = vector.load %arg5[%c0_20, %c0_21, %c0_22] : memref<1x1x128xf32, #tpu.memory_space<vmem>>, vector<1x1x128xf32>
      %50 = vector.shape_cast %49 : vector<1x1x128xf32> to vector<1x128xf32>
      %51 = vector.shape_cast %48 : vector<1x128xf32> to vector<1x1x128xf32>
      tpu.vector_store %arg5[%c0_20, %c0_21, %c0_22], %51 {strides = array<i32>} : memref<1x1x128xf32, #tpu.memory_space<vmem>>, vector<1x1x128xf32>,
    } else {
    }
    return
  }
  func.func @transform_0(%arg0: i32, %arg1: i32) -> (i32, i32) {
    %c2_i32 = arith.constant 2 : i32
    %0 = arith.muli %arg0, %c2_i32 : i32
    %1 = arith.addi %0, %arg1 : i32
    %c2_i32_0 = arith.constant 2 : i32
    %2 = arith.minsi %1, %c2_i32_0 : i32
    %c0_i32 = arith.constant 0 : i32
    %c0_i32_1 = arith.constant 0 : i32
    return %2, %c0_i32 : i32, i32
  }
  func.func @transform_1(%arg0: i32, %arg1: i32) -> (i32, i32) {
    %c2_i32 = arith.constant 2 : i32
    %0 = arith.muli %arg0, %c2_i32 : i32
    %1 = arith.addi %0, %arg1 : i32
    %c2_i32_0 = arith.constant 2 : i32
    %2 = arith.minsi %1, %c2_i32_0 : i32
    %c0_i32 = arith.constant 0 : i32
    %c0_i32_1 = arith.constant 0 : i32
    return %c0_i32, %2 : i32, i32
  }
  func.func @transform_2(%arg0: i32, %arg1: i32) -> (i32, i32) {
    %c0_i32 = arith.constant 0 : i32
    %c0_i32_0 = arith.constant 0 : i32
    %c0_i32_1 = arith.constant 0 : i32
    return %c0_i32, %c0_i32_0 : i32, i32
  }
  func.func @transform_3(%arg0: i32, %arg1: i32) -> (i32, i32, i32) {
    %c0_i32 = arith.constant 0 : i32
    %c0_i32_0 = arith.constant 0 : i32
    %c0_i32_1 = arith.constant 0 : i32
    return %arg0, %c0_i32, %c0_i32_0 : i32, i32, i32
  }
}

</mosaic_0001>

<bundles_post_ra>
// kernel: tpu_custom_call.1
= control target key start
LH: loop header
LB: loop body
LE: loop exit
PB: predicated region body
PF: predicated region fallthrough
CT: control target
= control target key end

     0   :  { %8 = vsyncpa [#allocation5], 0  ;;  %s1557_s0 = inlined_call_operand.vmem [shape: f32[300,13], index: 0, kind: input, shape index: {}]   ;;  %s1558_s1 = inlined_call_operand.vmem [shape: s32[1,300], index: 1, kind: input, shape index: {}]   ;;  %s1559_s2 = inlined_call_operand.vmem [shape: f32[16,1], index: 2, kind: input, shape index: {}]   ;;  %s1560_s3 = inlined_call_operand.hbm [shape: f32[2,1,128], index: 3, kind: output, shape index: {}]  }
   0x1   :  { %10 = vsyncpa [#allocation5 + $0x1], 0  ;;  %s1199_s12 = smov 0   ;;  %s1201_s13 = smov 0  }
   0x2   :  { %s1203_s14 = smov 0   ;;  %s1205_s15 = smov 0  }
   0x3   :  { %s1207_s16 = smov 0   ;;  %s1209_s17 = smov 0  }
   0x4   :  { %s1211_s18 = smov 0   ;;  %s1213_s19 = smov 0  }
   0x5 LB: > { %s766_s20 = sadd.s32 4294967295, %s1171_s19   ;;  %s767_s21 = sadd.s32 4294967294, %s1171_s19   ;;  %s1171_s19 = sphi %s1213_s19, %s16_s19   ;;  %s1167_s18 = sphi %s1211_s18, %s1581_s18   ;;  %s1163_s17 = sphi %s1209_s17, %s1580_s17   ;;  %s1159_s16 = sphi %s1207_s16, %s1579_s16   ;;  %s1155_s15 = sphi %s1205_s15, %s1578_s15   ;;  %s1151_s14 = sphi %s1203_s14, %s1577_s14   ;;  %s1147_s13 = sphi %s1201_s13, %s1576_s13   ;;  %s1143_s12 = sphi %s1199_s12, %s1575_s12  }
   0x6   : > { %s25_s22 = sadd.s32 1, %s1163_s17  ;;  %s28_s23 = sadd.s32 1, %s1167_s18 }
   0x7   : > { %p26_p0 = scmp.ge.s32.totalorder %s25_s22, 2  ;;  %p134_p1 = scmp.ne.s32.totalorder %s1151_s14, %s1147_s13 }
   0x8   : > { %p135_p2 = scmp.eq.s32.totalorder %s766_s20, 3  ;;  %p140_p4 = scmp.ne.s32.totalorder %s1147_s13, %s1143_s12 }
   0x9   : > { %s1583_s22 = smov (%p26_p0, %s25_s22), 0  ;;  %s1585_s23 = smov (!%p26_p0, %s28_s23), %s1167_s18 }
   0xa   : > { %p1248_p3 = por %p135_p2, %p134_p1  ;;  %p30_p5 = scmp.ge.s32.totalorder %s1585_s23, 2 }
   0xb   : > { %p141_p6 = scmp.eq.s32.totalorder %s767_s21, 3  ;;  %p774_p7 = scmp.ge.s32.totalorder %s1171_s19, 1 }
   0xc   : > { %p201_p8 = scmp.lt.s32.totalorder %s1171_s19, 5  ;;  %s1587_s23 = smov (%p30_p5, %s1585_s23), 0 }
   0xd   : > { %p1258_p9 = por %p141_p6, %p140_p4  ;;  %s121_s26 = ssub.s32 %s1167_s18, %s1587_s23 }
   0xe   : > { %p202_p10 = pnand %p774_p7, %p201_p8  ;;  %s124_s27 = sadd.s32 1, %s1151_s14 }
   0xf   : > { %p122_p11 = scmp.eq.s32.totalorder %s121_s26, 0  ;;  %s237_s29 = sand.u32 (!%p202_p10), 1, %s1147_s13  }
  0x10   : > { %205 = sbr.rel (%p202_p10) target bundleno = 934 (0x3a6), region = 32  ;;  %s775_s30 = sshll.u32 (!%p202_p10), %s1159_s16, 1 }
  0x11   : > { %s1266_s28 = scalar_select %p122_p11, %s1151_s14, %s124_s27  }
  0x12   : > { %s1271_s4 = sadd.s32 (!%p202_p10), %s1155_s15, %s775_s30  ;;  %s1288_s26 = scalar_lea.vmem (!%p202_p10), [#allocation4], %s237_s29 }
  0x13   : > { %p241_p12 = scmp.lt.s32.totalorder (!%p202_p10), %s1271_s4, 2  ;;  %p782_p0 = scmp.ne.s32.totalorder (!%p202_p10), %s1155_s15, 0 }
  0x17   : > { %s242_s5 = scalar_select %p241_p12, %s1271_s4, 2 }
  0x18   : > { %275 = sbr.rel (%p782_p0) target bundleno = 31 (0x1f), region = 36  ;;  %vm276_vm0 = vcmask (!%p782_p0), 105472   ;;  %vm279_vm1 = vcmask (!%p782_p0), 7168   ;;  %v1173_v0 = vmov (!%p782_p0), 0.0  }
  0x19   : > { %s776_s6 = sshll.u32 %s242_s5, 4  ;;  %s1589_s5 = smov (!%p241_p12, %s242_s5), 2  ;;  %277 = vst.msk [vmem:[#allocation2] sm:$0xff] (!%p782_p0), %vm276_vm0, %v1173_v0  ;;  %278 = vst.msk [vmem:[#allocation2 + $0x8] sm:$0xff] (!%p782_p0), %vm276_vm0, %v1173_v0 }
  0x1a   : > { %p248_p13 = scmp.lt.s32.totalorder %s776_s6, 37  ;;  %s267_s9 = scalar_lea.vmem %s1558_s1, %s1589_s5  ;;  %280 = vst.msk [vmem:[#allocation3] sm:$0xff] (!%p782_p0), %vm279_vm1, %v1173_v0  ;;  %281 = vst.msk [vmem:[#allocation3 + $0x8] sm:$0xff] (!%p782_p0), %vm279_vm1, %v1173_v0 }
  0x1c   : > { %s1591_s6 = smov (!%p248_p13, %s776_s6), 37 }
  0x1d   : > { %s777_s10 = sshll.u32 %s1591_s6, 3 }
  0x1e   : > { %s1284_s21 = scalar_lea.vmem %s1557_s0, %s777_s10 }
  0x1f PF: > { %s784_s27 = sshll.u32 %s1271_s4, 7  ;;  %v1293_v1 = vld [vmem:[%s1284_s21] sm:$0xff]  ;;  %v1296_v2 = vld [vmem:[%s1284_s21 + $0x8] sm:$0xff]  ;;  %v1299_v3 = vld [vmem:[%s1284_s21 + $0x10] sm:$0xff]  ;;  %v302_v4 = vlaneseq }
  0x20   : > { %v1302_v5 = vld [vmem:[%s1284_s21 + $0x18] sm:$0xff]  ;;  %v1305_v6 = vld [vmem:[%s1284_s21 + $0x20] sm:$0xff]  ;;  %v1308_v7 = vld [vmem:[%s1284_s21 + $0x28] sm:$0xff]  ;;  %s1312_s30 = sadd.s32 128, %s784_s27 }
  0x21   : > { %v1315_v8 = vld [vmem:[%s1284_s21 + $0x30] sm:$0xff]  ;;  %v1318_v9 = vld [vmem:[%s1284_s21 + $0x38] sm:$0xff]  ;;  %v1321_v10 = vld [vmem:[%s1284_s21 + $0x40] sm:$0xff]  ;;  %v1324_v11 = vshrl.u32 %v302_v4, 7  ;;  %p785_p1 = scmp.gt.s32.totalorder %s1312_s30, 300 }
  0x22   : > { %v1327_v12 = vld [vmem:[%s1284_s21 + $0x48] sm:$0xff]  ;;  %v1330_v13 = vld [vmem:[%s1284_s21 + $0x50] sm:$0xff]  ;;  %v1333_v14 = vld [vmem:[%s1284_s21 + $0x58] sm:$0xff]  ;;  %v917_v21 = vpack.c.bf16 (!%p785_p1), %v1296_v2, %v1293_v1  ;;  %v921_v22 = vpack.c.bf16 (!%p785_p1), %v1302_v5, %v1299_v3  ;;  %v925_v24 = vpack.c.bf16 (!%p785_p1), %v1308_v7, %v1305_v6  ;;  %v1174_v26 = vmov (!%p785_p1), 1.0  }
  0x23   : > { %v1336_v15 = vld [vmem:[%s1284_s21 + $0x60] sm:$0xff]  ;;  %v1339_v16 = vld [vmem:[%s1284_s21 + $0x68] sm:$0xff]  ;;  %v1342_v17 = vld [vmem:[%s1284_s21 + $0x70] sm:$0xff]  ;;  %v1345_v18 = vadd.s32 8, %v1324_v11  ;;  %310 = sbr.rel (%p785_p1) target bundleno = 284 (0x11c), region = 40  ;;  %v313_v23 = vsub.s32 (!%p785_p1), 0, %v1324_v11  ;;  %v929_v29 = vpack.c.bf16 (!%p785_p1), %v1318_v9, %v1315_v8  ;;  %v933_v31 = vpack.c.bf16 (!%p785_p1), %v1327_v12, %v1321_v10 }
  0x24   : > { %v1348_v19 = vld [vmem:[%s1284_s21 + $0x78] sm:$0xff]  ;;  %v1355_v20 = vld [vmem:[%s267_s9] sm:$0x1]  ;;  %918 = vmatprep.subr.bf16.mxu0 (!%p785_p1), %v917_v21  ;;  %v1175_v27 = vmov (!%p785_p1), 0.0   ;;  %v937_v32 = vpack.c.bf16 (!%p785_p1), %v1333_v14, %v1330_v13  ;;  %v941_v33 = vpack.c.bf16 (!%p785_p1), %v1339_v16, %v1336_v15  ;;  %v401_v35 = vld [vmem:[#allocation3] sm:$0xff] (!%p785_p1)  ;;  %vm409_vm4 = vcmask (!%p785_p1), 7168  }
  0x25   : > { %920 = vmatpush3.bf16.msra.mxu0 (!%p785_p1), %v917_v21  ;;  %v314_v25 = vrot.slane (!%p785_p1), %v1355_v20, %v313_v23  ;;  %v945_v34 = vpack.c.bf16 (!%p785_p1), %v1348_v19, %v1342_v17  ;;  %v402_v38 = vld [vmem:[#allocation3 + $0x8] sm:$0xff] (!%p785_p1)  ;;  %v320_v41 = vld [vmem:[#allocation2 + $0x8] sm:$0xff] (!%p785_p1)  ;;  %v319_v42 = vld [vmem:[#allocation2] sm:$0xff] (!%p785_p1)  ;;  %vm398_vm5 = vcmask (!%p785_p1), 105472  }
  0x26   : > { %922 = vmatprep.subr.bf16.mxu0 (!%p785_p1), %v921_v22 }
  0x27   : > { %vm315_vm2 = vcmp.eq.s32.totalorder (!%p785_p1), %v1324_v11, %v314_v25  ;;  %vm316_vm3 = vcmp.eq.s32.totalorder (!%p785_p1), %v1345_v18, %v314_v25 }
  0x28   : > { %879 = vmatprep.mubr.msk.f32.mxu0 (!%p785_p1), %vm315_vm2, %v1174_v26  ;;  %v317_v28 = vsel (!%p785_p1), %vm315_vm2, 1.0, %v1175_v27  ;;  %v318_v30 = vsel (!%p785_p1), %vm316_vm3, 1.0, %v1175_v27 }
  0x29   : > { %924 = vmatpush3.bf16.msra.mxu0 (!%p785_p1), %v921_v22  ;;  %403 = vadd.xlane.f32.xlu0 (!%p785_p1), %v317_v28 }
  0x2a   : > { %926 = vmatprep.subr.bf16.mxu0 %v925_v24 }
  0x2d   : > { %928 = vmatpush3.bf16.msra.mxu0 %v925_v24  ;;  %405 = vadd.xlane.f32.xlu0 %v318_v30 }
  0x2e   : > { %930 = vmatprep.subr.bf16.mxu0 %v929_v29 }
  0x31   : > { %932 = vmatpush3.bf16.msra.mxu0 %v929_v29 }
  0x32   : > { %934 = vmatprep.subr.bf16.mxu0 %v933_v31 }
  0x35   : > { %936 = vmatpush3.bf16.msra.mxu0 %v933_v31 }
  0x36   : > { %938 = vmatprep.subr.bf16.mxu0 %v937_v32 }
  0x39   : > { %940 = vmatpush3.bf16.msra.mxu0 %v937_v32 }
  0x3a   : > { %942 = vmatprep.subr.bf16.mxu0 %v941_v33 }
  0x3d   : > { %944 = vmatpush3.bf16.msra.mxu0 %v941_v33 }
  0x3e   : > { %946 = vmatprep.subr.bf16.mxu0 %v945_v34 }
  0x41   : > { %948 = vmatpush3.bf16.msra.mxu0 %v945_v34 }
  0x44   : > { %880 = vmatmul.mubr.msk.f32.vlgmr.msra.gmra.mrb[0].mxu0 %vm316_vm3, %v1174_v26 }
  0xb6   : > { %v404_v36 = vpop.xlane.xlu0 %403 }
  0xb7   : > { %v407_v37 = vadd.f32 %v404_v36, %v401_v35 }
  0xb9   : > { %410 = vst.msk [vmem:[#allocation3] sm:$0xff] %vm409_vm4, %v407_v37 }
  0xba   : > { %v406_v39 = vpop.xlane.xlu0 %405 }
  0xbb   : > { %v408_v40 = vadd.f32 %v406_v39, %v402_v38 }
  0xbd   : > { %411 = vst.msk [vmem:[#allocation3 + $0x8] sm:$0xff] %vm409_vm4, %v408_v40 }
 0x117   : > { %v881_v43 = vpop.f32.mrb[0].mxu0 }
 0x118   : > { %v397_v44 = vadd.f32 %v881_v43, %v320_v41  ;;  %v387_v45 = vpop.f32.mrb[1].mxu0 }
 0x119   : > { %v396_v46 = vadd.f32 %v387_v45, %v319_v42 }
 0x11a   : > { %400 = vst.msk [vmem:[#allocation2 + $0x8] sm:$0xff] %vm398_vm5, %v397_v44 }
 0x11b   : > { %399 = vst.msk [vmem:[#allocation2] sm:$0xff] %vm398_vm5, %v396_v46 }
 0x11c PF: > { %p788_p2 = scmp.le.s32.totalorder %s1312_s30, 300 }
 0x11d   : > { %v1385_v47 = vstv (!%p788_p2), %s784_s27  ;;  %v420_v48 = vadd.s32 (!%p788_p2), 16, %v1324_v11  ;;  %v421_v49 = vadd.s32 (!%p788_p2), 24, %v1324_v11  ;;  %v949_v52 = vpack.c.bf16 (!%p788_p2), %v1296_v2, %v1293_v1  ;;  %v608_v43 = vld [vmem:[#allocation3] sm:$0xff] (!%p788_p2)  ;;  %v609_v44 = vld [vmem:[#allocation3 + $0x8] sm:$0xff] (!%p788_p2) }
 0x11e   : > { %414 = sbr.rel (%p788_p2) target bundleno = 538 (0x21a), region = 44  ;;  %v434_v50 = vadd.s32 (!%p788_p2), %v1385_v47, %v1324_v11  ;;  %v435_v51 = vadd.s32 (!%p788_p2), %v1385_v47, %v1345_v18  ;;  %v422_v53 = vadd.s32 (!%p788_p2), 32, %v1324_v11  ;;  %v955_v56 = vpack.c.bf16 (!%p788_p2), %v1302_v5, %v1299_v3 }
 0x11f   : > { %v436_v54 = vadd.s32 (!%p788_p2), %v420_v48, %v1385_v47  ;;  %v437_v55 = vadd.s32 (!%p788_p2), %v421_v49, %v1385_v47  ;;  %v423_v57 = vadd.s32 (!%p788_p2), 40, %v1324_v11  ;;  %v424_v59 = vadd.s32 (!%p788_p2), 48, %v1324_v11 }
 0x120   : > { %vm450_vm6 = vcmp.lt.s32.totalorder (!%p788_p2), %v434_v50, 300  ;;  %vm451_vm7 = vcmp.lt.s32.totalorder (!%p788_p2), %v435_v51, 300  ;;  %v438_v58 = vadd.s32 (!%p788_p2), %v422_v53, %v1385_v47  ;;  %v425_v61 = vadd.s32 (!%p788_p2), 56, %v1324_v11 }
 0x121   : > { %vm950_vm8 = vmpackc.low (!%p788_p2), %vm451_vm7, %vm450_vm6  ;;  %vm452_vm9 = vcmp.lt.s32.totalorder (!%p788_p2), %v436_v54, 300  ;;  %vm453_vm10 = vcmp.lt.s32.totalorder (!%p788_p2), %v437_v55, 300  ;;  %v439_v60 = vadd.s32 (!%p788_p2), %v423_v57, %v1385_v47  ;;  %v440_v63 = vadd.s32 (!%p788_p2), %v424_v59, %v1385_v47 }
 0x122   : > { %951 = vmatprep.subr.msk.bf16.mxu0 (!%p788_p2), %vm950_vm8, %v949_v52  ;;  %vm1405_vm11 = vmpackc.low (!%p788_p2), %vm453_vm10, %vm452_vm9  ;;  %vm454_vm12 = vcmp.lt.s32.totalorder (!%p788_p2), %v438_v58, 300  ;;  %v426_v0 = vadd.s32 (!%p788_p2), 64, %v1324_v11  ;;  %v441_v1 = vadd.s32 (!%p788_p2), %v425_v61, %v1385_v47  ;;  %v427_v2 = vadd.s32 (!%p788_p2), 72, %v1324_v11  ;;  %v526_v48 = vld [vmem:[#allocation2] sm:$0xff] (!%p788_p2) }
 0x123   : > { %954 = vmatpush3.bf16.msk.msra.mxu0 (!%p788_p2), %vm950_vm8, %v949_v52  ;;  %vm455_vm13 = vcmp.lt.s32.totalorder (!%p788_p2), %v439_v60, 300  ;;  %v961_v3 = vpack.c.bf16 (!%p788_p2), %v1308_v7, %v1305_v6  ;;  %v428_v5 = vadd.s32 (!%p788_p2), 80, %v1324_v11  ;;  %v429_v22 = vadd.s32 (!%p788_p2), 88, %v1324_v11 }
 0x124   : > { %957 = vmatprep.subr.msk.bf16.mxu0 (!%p788_p2), %vm1405_vm11, %v955_v56  ;;  %vm1418_vm14 = vmpackc.low (!%p788_p2), %vm455_vm13, %vm454_vm12  ;;  %vm456_vm15 = vcmp.lt.s32.totalorder (!%p788_p2), %v440_v63, 300  ;;  %vm457_vm0 = vcmp.lt.s32.totalorder (!%p788_p2), %v441_v1, 300  ;;  %v442_v23 = vadd.s32 (!%p788_p2), %v426_v0, %v1385_v47  ;;  %v443_v24 = vadd.s32 (!%p788_p2), %v427_v2, %v1385_v47 }
 0x125   : > { %v967_v6 = vpack.c.bf16 %v1318_v9, %v1315_v8  ;;  %v444_v7 = vadd.s32 %v428_v5, %v1385_v47  ;;  %v430_v25 = vadd.s32 96, %v1324_v11  ;;  %vm1433_vm1 = vmpackc.low %vm457_vm0, %vm456_vm15  ;;  %v445_v27 = vadd.s32 %v429_v22, %v1385_v47 }
 0x126   : > { %v416_v28 = vand.u32 127, %v302_v4  ;;  %vm458_vm2 = vcmp.lt.s32.totalorder %v442_v23, 300  ;;  %vm459_vm3 = vcmp.lt.s32.totalorder %v443_v24, 300  ;;  %v431_v29 = vadd.s32 104, %v1324_v11 }
 0x127   : > { %960 = vmatpush3.bf16.msk.msra.mxu0 %vm1405_vm11, %v955_v56  ;;  %v468_v30 = vsub.s32 0, %v1324_v11  ;;  %v973_v8 = vpack.c.bf16 %v1327_v12, %v1321_v10  ;;  %vm460_vm4 = vcmp.lt.s32.totalorder %v444_v7, 300  ;;  %v446_v31 = vadd.s32 %v430_v25, %v1385_v47  ;;  %vm1451_vm5 = vmpackc.low %vm459_vm3, %vm458_vm2 }
 0x128   : > { %963 = vmatprep.subr.msk.bf16.mxu0 %vm1418_vm14, %v961_v3  ;;  %v418_v9 = vadd.s32 %v1385_v47, %v416_v28  ;;  %v432_v32 = vadd.s32 112, %v1324_v11  ;;  %vm461_vm6 = vcmp.lt.s32.totalorder %v445_v27, 300  ;;  %v447_v10 = vadd.s32 %v431_v29, %v1385_v47 }
 0x129   : > { %v469_v33 = vrot.slane %v1355_v20, %v468_v30  ;;  %v433_v12 = vadd.s32 120, %v1324_v11  ;;  %v979_v20 = vpack.c.bf16 %v1333_v14, %v1330_v13  ;;  %vm1467_vm11 = vmpackc.low %vm461_vm6, %vm460_vm4  ;;  %v1176_v36 = vmov 1.0  }
 0x12a   : > { %vm419_vm7 = vcmp.lt.s32.totalorder %v418_v9, 300  ;;  %v1177_v37 = vmov 0.0   ;;  %vm462_vm12 = vcmp.lt.s32.totalorder %v446_v31, 300  ;;  %v448_v40 = vadd.s32 %v432_v32, %v1385_v47 }
 0x12b   : > { %966 = vmatpush3.bf16.msk.msra.mxu0 %vm1418_vm14, %v961_v3  ;;  %vm470_vm8 = vcmp.eq.s32.totalorder %v1324_v11, %v469_v33  ;;  %vm471_vm9 = vcmp.eq.s32.totalorder %v1345_v18, %v469_v33  ;;  %vm463_vm14 = vcmp.lt.s32.totalorder %v447_v10, 300  ;;  %v449_v13 = vadd.s32 %v433_v12, %v1385_v47  ;;  %v527_v47 = vld [vmem:[#allocation2 + $0x8] sm:$0xff] }
 0x12c   : > { %969 = vmatprep.subr.msk.bf16.mxu0 %vm1433_vm1, %v967_v6  ;;  %vm474_vm10 = vmand %vm470_vm8, %vm419_vm7  ;;  %v985_v41 = vpack.c.bf16 %v1339_v16, %v1336_v15  ;;  %vm464_vm0 = vcmp.lt.s32.totalorder %v448_v40, 300  ;;  %v991_v42 = vpack.c.bf16 %v1348_v19, %v1342_v17  ;;  %vm616_vm3 = vcmask 7168  }
 0x12d   : > { %914 = vmatprep.mubr.msk.f32.mxu0 %vm474_vm10, %v1176_v36  ;;  %v476_v38 = vsel %vm474_vm10, 1.0, %v1177_v37  ;;  %vm1472_vm13 = vmand %vm471_vm9, %vm419_vm7  ;;  %vm605_vm4 = vcmask 105472  }
 0x12e   : > { %610 = vadd.xlane.f32.xlu0 %v476_v38  ;;  %v477_v14 = vsel %vm1472_vm13, 1.0, %v1177_v37  ;;  %vm986_vm15 = vmpackc.low %vm463_vm14, %vm462_vm12 }
 0x12f   : > { %972 = vmatpush3.bf16.msk.msra.mxu0 %vm1433_vm1, %v967_v6  ;;  %vm465_vm1 = vcmp.lt.s32.totalorder %v449_v13, 300 }
 0x130   : > { %975 = vmatprep.subr.msk.bf16.mxu0 %vm1451_vm5, %v973_v8  ;;  %vm992_vm2 = vmpackc.low %vm465_vm1, %vm464_vm0 }
 0x132   : > { %612 = vadd.xlane.f32.xlu0 %v477_v14 }
 0x133   : > { %978 = vmatpush3.bf16.msk.msra.mxu0 %vm1451_vm5, %v973_v8 }
 0x134   : > { %981 = vmatprep.subr.msk.bf16.mxu0 %vm1467_vm11, %v979_v20 }
 0x137   : > { %984 = vmatpush3.bf16.msk.msra.mxu0 %vm1467_vm11, %v979_v20 }
 0x138   : > { %987 = vmatprep.subr.msk.bf16.mxu0 %vm986_vm15, %v985_v41 }
 0x13b   : > { %990 = vmatpush3.bf16.msk.msra.mxu0 %vm986_vm15, %v985_v41 }
 0x13c   : > { %993 = vmatprep.subr.msk.bf16.mxu0 %vm992_vm2, %v991_v42 }
 0x13f   : > { %996 = vmatpush3.bf16.msk.msra.mxu0 %vm992_vm2, %v991_v42 }
 0x142   : > { %915 = vmatmul.mubr.msk.f32.vlgmr.msra.gmra.mrb[0].mxu0 %vm1472_vm13, %v1176_v36 }
 0x1bb   : > { %v611_v15 = vpop.xlane.xlu0 %610 }
 0x1bc   : > { %v614_v16 = vadd.f32 %v611_v15, %v608_v43 }
 0x1be   : > { %617 = vst.msk [vmem:[#allocation3] sm:$0xff] %vm616_vm3, %v614_v16 }
 0x1bf   : > { %v613_v45 = vpop.xlane.xlu0 %612 }
 0x1c0   : > { %v615_v46 = vadd.f32 %v613_v45, %v609_v44 }
 0x1c2   : > { %618 = vst.msk [vmem:[#allocation3 + $0x8] sm:$0xff] %vm616_vm3, %v615_v46 }
 0x215   : > { %v916_v49 = vpop.f32.mrb[0].mxu0 }
 0x216   : > { %v604_v17 = vadd.f32 %v916_v49, %v527_v47  ;;  %v594_v19 = vpop.f32.mrb[1].mxu0 }
 0x217   : > { %v603_v50 = vadd.f32 %v594_v19, %v526_v48 }
 0x218   : > { %607 = vst.msk [vmem:[#allocation2 + $0x8] sm:$0xff] %vm605_vm4, %v604_v17 }
 0x219   : > { %606 = vst.msk [vmem:[#allocation2] sm:$0xff] %vm605_vm4, %v603_v50 }
 0x21a PF: > { %p807_p4 = scmp.ne.s32.totalorder %s1155_s15, 1 }
 0x21b   : > { %v624_v51 = vand.u32 (!%p807_p4), 127, %v302_v4  ;;  %vm631_vm5 = vcmask (!%p807_p4), 105472   ;;  %v638_v58 = vld [vmem:[%s1559_s2] sm:$0xff] (!%p807_p4)  ;;  %v655_v59 = vld [vmem:[#allocation3] sm:$0xff] (!%p807_p4)  ;;  %v656_v4 = vld [vmem:[#allocation3 + $0x8] sm:$0xff] (!%p807_p4)  ;;  %vm642_vm8 = vcmask (!%p807_p4), 7168  }
 0x21c   : > { %622 = sbr.rel (%p807_p4) target bundleno = 910 (0x38e), region = 48  ;;  %v639_v61 = vld [vmem:[%s1559_s2 + $0x8] sm:$0xff] (!%p807_p4) }
 0x21d   : > { %vm625_vm6 = vcmp.eq.s32.totalorder (!%p807_p4), %v1324_v11, %v624_v51  ;;  %vm626_vm7 = vcmp.eq.s32.totalorder (!%p807_p4), %v1345_v18, %v624_v51  ;;  %v657_v11 = vmul.f32 (!%p807_p4), %v655_v59, %v638_v58  ;;  %v658_v18 = vmul.f32 (!%p807_p4), %v656_v4, %v639_v61 }
 0x21e   : > { %vm672_vm9 = vcmp.eq.s32.totalorder (!%p807_p4), %v624_v51, 1  ;;  %vm671_vm10 = vcmp.eq.s32.totalorder (!%p807_p4), %v624_v51, 0 }
 0x21f   : > { %v628_v53 = vld [vmem:[#allocation2 + $0x8] sm:$0xff] (!%p807_p4)  ;;  %v659_v3 = vsel (!%p807_p4), %vm642_vm8, %v657_v11, 0.0  ;;  %v660_v5 = vsel (!%p807_p4), %vm642_vm8, %v658_v18, 0.0 }
 0x220   : > { %v627_v52 = vld [vmem:[#allocation2] sm:$0xff] (!%p807_p4)  ;;  %v630_v55 = vsel (!%p807_p4), %vm626_vm7, %v628_v53, 0.0  ;;  %v661_v22 = vadd.f32 (!%p807_p4), %v660_v5, %v659_v3 }
 0x221   : > { %v629_v54 = vsel (!%p807_p4), %vm625_vm6, %v627_v52, 0.0  ;;  %v635_v57 = vsel (!%p807_p4), %vm631_vm5, %v630_v55, 0.0 }
 0x222   : > { %v632_v56 = vsel (!%p807_p4), %vm631_vm5, %v629_v54, 0.0 }
 0x223   : > { %633 = vadd.xlane.f32.xlu0 %v632_v56 }
 0x227   : > { %636 = vadd.xlane.f32.xlu0 %v635_v57 }
 0x2b0   : > { %v634_v60 = vpop.xlane.xlu0 %633 }
 0x2b1   : > { %v640_v62 = vmul.f32 %v638_v58, %v634_v60 }
 0x2b3   : > { %v643_v1 = vsel %vm642_vm8, %v640_v62, 0.0 }
 0x2b4   : > { %v637_v63 = vpop.xlane.xlu0 %636 }
 0x2b5   : > { %v641_v0 = vmul.f32 %v639_v61, %v637_v63 }
 0x2b7   : > { %v644_v2 = vsel %vm642_vm8, %v641_v0, 0.0 }
 0x2b8   : > { %v645_v21 = vadd.f32 %v644_v2, %v643_v1 }
 0x2ba   : > { %646 = vadd.xlane.f32.xlu1 %v645_v21 }
 0x2be   : > { %662 = vadd.xlane.f32.xlu1 %v661_v22 }
 0x347   : > { %v647_v23 = vpop.xlane.xlu1 %646 }
 0x348   : > { %v648_v24 = vrot.slane %v647_v23, 4 }
 0x34a   : > { %v649_v6 = vadd.f32 %v648_v24, %v647_v23 }
 0x34b   : > { %v663_v7 = vpop.xlane.xlu1 %662 }
 0x34c   : > { %v650_v25 = vrot.slane %v649_v6, 2  ;;  %v664_v26 = vrot.slane %v663_v7, 4 }
 0x34e   : > { %v665_v27 = vadd.f32 %v664_v26, %v663_v7  ;;  %v651_v28 = vadd.f32 %v650_v25, %v649_v6 }
 0x350   : > { %v666_v29 = vrot.slane %v665_v27, 2  ;;  %v652_v30 = vrot.slane %v651_v28, 1 }
 0x352   : > { %v667_v8 = vadd.f32 %v666_v29, %v665_v27  ;;  %v653_v9 = vadd.f32 %v652_v30, %v651_v28 }
 0x354   : > { %997 = vpush %v653_v9  ;;  %v668_v31 = vrot.slane %v667_v8, 1 }
 0x356   : > { %v669_v32 = vadd.f32 %v668_v31, %v667_v8 }
 0x358   : > { %999 = vpush %v669_v32 }
 0x385   : > { %s998_s9 = spop %997 }
 0x386   : > { %v675_v34 = vstv %s998_s9 }
 0x389   : > { %s1000_s10 = spop %999 }
 0x38a   : > { %v673_v33 = vstv %s1000_s10 }
 0x38b   : > { %v674_v10 = vsel %vm672_vm9, %v673_v33, 0.0 }
 0x38c   : > { %v676_v12 = vsel %vm671_vm10, %v675_v34, %v674_v10 }
 0x38d   : > { %677 = vst [vmem:[%s1288_s26] sm:$0x1] %v676_v12 }
 0x38e PF: > { %s808_s11 = sshll.u32 %s1159_s16, 4  ;;  %s691_s30 = sshll.u32 %s1288_s26, 4  ;;  %s692_s30 = int_to_ptr.vmem [resolvable:$true] %s691_s30 }
 0x38f   : > { %s1507_s27 = scalar_lea.hbm %s1560_s3, %s808_s11  ;;  %s679_s6 = scalar_lea.sflag [#allocation5], %s237_s29 }
 0x390   : > { %s1077_s7 = scalar_lea.vmem %s692_s30, 16  ;;  %s1178_s4 = smov [#allocation4]  }
 0x391   : > { %p1078_p5 = scmp.ne.s32.totalorder %s692_s30, %s1077_s7  ;;  %s1081_s5 = sshll.u32 %s1178_s4, 4  ;;  %s1082_s5 = int_to_ptr.vmem [resolvable:$false] %s1081_s5 }
 0x392   : > { %s1083_s15 = scalar_lea.vmem %s1082_s5, 32  ;;  %p1084_p8 = scmp.lt.s32.totalorder %s692_s30, %s1082_s5 }
 0x393   : > { %p1079_p6 = pnand %p1078_p5, %p1248_p3  ;;  %p1085_p10 = scmp.lt.s32.totalorder %s1083_s15, %s1077_s7 }
 0x395   : > { %p1080_p7 = pneg %p1079_p6  ;;  %p1086_p11 = por %p1085_p10, %p1084_p8 }
 0x397   : > { %p1087_p12 = pnand %p1086_p11, %p1080_p7 }
 0x399   : > { %1090 = shalt.err (!%p1087_p12)
}
 0x39a   : > { %s1091_s16 = scalar_lea.hbm %s1507_s27, 16  ;;  %s1095_s8 = scalar_lea.hbm %s1560_s3, 32 }
 0x39b   : > { %p1092_p13 = scmp.ne.s32.totalorder %s1507_s27, %s1091_s16  ;;  %p1096_p2 = scmp.lt.u32.totalorder %s1507_s27, %s1560_s3 }
 0x39c   : > { %p1097_p4 = scmp.lt.u32.totalorder %s1095_s8, %s1091_s16  ;;  %p1099_p6 = scmp.lt.u32.totalorder %s1091_s16, %s1507_s27 }
 0x39d   : > { %p1093_p0 = pnand %p1092_p13, %p1248_p3 }
 0x39e   : > { %p1098_p5 = por %p1097_p4, %p1096_p2 }
 0x39f   : > { %p1094_p1 = pneg %p1093_p0 }
 0x3a0   : > { %p1100_p7 = por %p1099_p6, %p1098_p5 }
 0x3a2   : > { %p1101_p8 = pnand %p1100_p7, %p1094_p1 }
 0x3a4   : > { %1104 = shalt.err (!%p1101_p8)
}
 0x3a5   : > { %1001 = dma.vmem_to_hbm [thread:$0]  (%p1248_p3), %s692_s30, 16, %s1507_s27, %s679_s6  }
 0x3a6 PF: > { %p1007_p10 = scmp.ge.s32.totalorder %s1171_s19, 2  ;;  %s703_s11 = sand.u32 1, %s1143_s12  }
 0x3a7   : > { %s704_s20 = scalar_lea.sflag [#allocation5], %s703_s11 }
 0x3a8   : > { %p1004_p11 = pnand %p1007_p10, %p1258_p9 }
 0x3aa   : > { %1138 = dma.done.wait (!%p1004_p11), %s704_s20, 16  }
 0x3ab   : > { %1140 = vsyncadd (!%p1004_p11), %s704_s20, 4294967280  ;;  %s16_s19 = sadd.s32 1, %s1171_s19   ;;  %s1575_s12 = smov %s1147_s13 }
 0x3ac   : > { %p13_p12 = scmp.ge.s32.totalorder %s16_s19, 6   ;;  %s1576_s13 = smov %s1151_s14 }
 0x3ad   : > { %s1577_s14 = smov %s1266_s28  ;;  %s1578_s15 = smov %s1163_s17 }
 0x3ae   : > { %s1579_s16 = smov %s1167_s18  ;;  %s1580_s17 = smov %s1583_s22 }
 0x3af   : > { %s1581_s18 = smov %s1587_s23  ;;  %15 = sbr.rel (!%p13_p12) target bundleno = 5 (0x5), region = 86 }
 0x3b6   :  { %708 = vsyncpa [#allocation5], 1 }
 0x3b7   :  { %710 = vsyncpa [#allocation5 + $0x1], 1 }

</bundles_post_ra>
